<compile_context>
chip_gen: v7x
topology: tpu7x:2x2x1
jax: 0.10.0
libtpu: 0.0.40
codegen_flags: <defaults>
</compile_context>

<pallas_src>
import jax
import jax.numpy as jnp
from jax import lax
from jax.experimental import pallas as pl
from jax.experimental.pallas import tpu as pltpu


def _round_up(n, m):
    return ((n + m - 1) // m) * m


def _padded_block_bytes(rows, cols, itemsize=4):
    """VMEM footprint of one buffer of a 2-D f32 block, padded to the (8,128) tile."""
    return _round_up(max(int(rows), 1), 8) * _round_up(max(int(cols), 1), 128) * itemsize


def _vmem_capacity_bytes():
    """Physical VMEM of the local chip; conservative (v7x, 64 MiB) fallback."""
    try:
        cap = int(pltpu.get_tpu_info().vmem_capacity_bytes)
        if cap > 0:
            return cap
    except Exception:
        pass
    return 64 << 20


def _mlp_kernel(x_ref, w1_ref, b1_ref, w2_ref, b2_ref, o_ref):
    # x_ref : [TB_P, P*D_in]   packed batch tile (P rows of x per packed row), pipelined
    # w1_ref: [P*D_in, P*H]    kron(I_P, w1.T), VMEM-resident (constant index_map)
    # b1_ref: [1, P*H]         tile(b1, P)
    # w2_ref: [P*H, P*OUT]     kron(I_P, w2.T), VMEM-resident
    # b2_ref: [1, P*OUT]       tile(b2, P)
    # o_ref : [TB_P, P*OUT]    packed output tile
    h = jnp.dot(x_ref[...], w1_ref[...], preferred_element_type=jnp.float32)
    h = jnp.maximum(h + b1_ref[...], 0.0)                     # bias + ReLU on the VPU
    o = jnp.dot(h, w2_ref[...], preferred_element_type=jnp.float32)
    o_ref[...] = (o + b2_ref[...]).astype(o_ref.dtype)
    # TODO(synk): bf16 streaming of x / weights (f32 accumulation) if accuracy allows.


def single_hidden_layer_nn(x, w1, b1, w2, b2, *, tile_b=None, core_parallel=False):
    """
    x  : [B, input_dim]            float32
    w1 : [hidden_dim, input_dim]   (PyTorch nn.Linear layout, NOT transposed)
    b1 : [hidden_dim]
    w2 : [out_dim, hidden_dim]     (out_dim == 2 for this module)
    b2 : [out_dim]
    core_parallel: set True on v7x (2 TensorCores) to shard the batch grid across
                   both cores; leave False on single-core chips (v5e / v6e).
    returns [B, out_dim] float32
    """
    B, d_in = x.shape
    h_dim = w1.shape[0]
    out_dim = w2.shape[0]

    # ---- Lane-dense repack factor -------------------------------------------
    # Pack P consecutive rows of x into one 128-wide packed row so the x / h /
    # out tiles are lane-dense and layer-1 contraction runs at K = 128.
    if d_in <= 128 and 128 % d_in == 0:
        P = 128 // d_in
    else:
        P = 1  # fallback: un-packed layout (correct, just less lane-efficient)
    row_group = 8 * P                       # tile granularity: 8 sublanes of packed rows

    # ---- Tile-size selection from a padded-(8,128) VMEM budget ----------------
    nbuf = 2                                # BlockSpec double-buffering
    itemsize = 4                            # f32
    vmem_cap = _vmem_capacity_bytes()
    vmem_cap_limit = (vmem_cap * 3) // 4    # ~48 MiB on v7x (64), ~96 MiB on v5e/v6e (128)

    param_bytes = (_padded_block_bytes(P * d_in, P * h_dim)
                   + _padded_block_bytes(1, P * h_dim)
                   + _padded_block_bytes(P * h_dim, P * out_dim)
                   + _padded_block_bytes(1, P * out_dim))
    # Padded VMEM bytes per packed row: double-buffered x + out blocks, the
    # in-kernel h intermediate (+ elementwise temp), and the layer-2 dot result.
    per_packed_row = itemsize * (nbuf * _round_up(P * d_in, 128)
                                 + (nbuf + 1) * _round_up(P * out_dim, 128)
                                 + 2 * _round_up(P * h_dim, 128))
    fixed_bytes = nbuf * param_bytes + (2 << 20)   # resident params + compiler headroom

    if tile_b is None:
        budget = max(vmem_cap_limit - fixed_bytes, 8 * per_packed_row)
        tile_b = (budget // per_packed_row) * P
        tile_b = min(tile_b, 1 << 16)       # >= ~4 MiB of x per step: step overhead <~10-20%
    tile_b = max(row_group, (int(tile_b) // row_group) * row_group)
    tile_b = min(tile_b, _round_up(B, row_group))   # don't over-pad tiny batches

    b_pad = _round_up(B, tile_b)
    if b_pad != B:
        x = jnp.pad(x, ((0, b_pad - B), (0, 0)))

    # ---- Free (row-major) repack of x; block-diagonal weights -----------------
    xp = x.reshape(b_pad // P, P * d_in)                          # [B/P, <=128]
    eye_p = jnp.eye(P, dtype=jnp.float32)
    w1_bd = jnp.kron(eye_p, w1.T.astype(jnp.float32))             # [P*d_in, P*H]
    w2_bd = jnp.kron(eye_p, w2.T.astype(jnp.float32))             # [P*H, P*OUT]
    b1_bd = jnp.tile(b1.astype(jnp.float32), P).reshape(1, P * h_dim)
    b2_bd = jnp.tile(b2.astype(jnp.float32), P).reshape(1, P * out_dim)

    tb_p = tile_b // P
    grid = (b_pad // tile_b,)

    vmem_needed = (nbuf * _padded_block_bytes(tb_p, P * d_in)      # x double buffer
                   + nbuf * _padded_block_bytes(tb_p, P * out_dim)  # out double buffer
                   + nbuf * param_bytes                             # resident params
                   + 2 * _padded_block_bytes(tb_p, P * h_dim)       # h + elementwise temp
                   + _padded_block_bytes(tb_p, P * out_dim)         # layer-2 dot result
                   + (2 << 20))                                     # compiler scratch headroom
    vmem_limit = int(min(max(vmem_needed, 16 << 20), vmem_cap_limit))

    # MXU work actually performed (the kron'd contraction is dense) + HBM bytes.
    flops = (2 * (b_pad // P) * (P * d_in) * (P * h_dim)
             + 2 * (b_pad // P) * (P * h_dim) * (P * out_dim))
    bytes_accessed = itemsize * (b_pad * d_in + b_pad * out_dim
                                 + int(w1_bd.size) + int(w2_bd.size)
                                 + int(b1_bd.size) + int(b2_bd.size))

    batch_sem = pltpu.CORE_PARALLEL if core_parallel else pltpu.PARALLEL

    # NOTE: the four parameter blocks use a constant index_map so they stay
    # VMEM-resident across grid steps (no re-DMA).  pipeline_mode=pl.Buffered(1)
    # would trim their duplicate pipeline buffer (~0.5 MiB) but is left off for
    # portability; the VMEM budget above accounts for the double buffers.
    out_packed = pl.pallas_call(
        _mlp_kernel,
        out_shape=jax.ShapeDtypeStruct((b_pad // P, P * out_dim), jnp.float32),
        grid=grid,
        in_specs=[
            pl.BlockSpec((tb_p, P * d_in), lambda i: (i, 0)),           # packed x tile
            pl.BlockSpec((P * d_in, P * h_dim), lambda i: (0, 0)),      # resident w1_bd
            pl.BlockSpec((1, P * h_dim), lambda i: (0, 0)),             # resident b1
            pl.BlockSpec((P * h_dim, P * out_dim), lambda i: (0, 0)),   # resident w2_bd
            pl.BlockSpec((1, P * out_dim), lambda i: (0, 0)),           # resident b2
        ],
        out_specs=pl.BlockSpec((tb_p, P * out_dim), lambda i: (i, 0)),
        compiler_params=pltpu.CompilerParams(
            dimension_semantics=(batch_sem,),
            vmem_limit_bytes=vmem_limit,
        ),
        cost_estimate=pl.CostEstimate(
            flops=int(flops), transcendentals=0, bytes_accessed=int(bytes_accessed)),
    )(xp, w1_bd, b1_bd, w2_bd, b2_bd)

    # Free row-major un-pack (no transpose): [B_pad/P, P*out] -> [B_pad, out] -> [B, out]
    return out_packed.reshape(b_pad, out_dim)[:B]


def _torch_linear_init(key, out_features, in_features):
    """Deterministic init matching nn.Linear's U(-1/sqrt(fan_in), 1/sqrt(fan_in))."""
    kw, kb = jax.random.split(key)
    bound = 1.0 / (in_features ** 0.5)
    w = jax.random.uniform(kw, (out_features, in_features),
                           minval=-bound, maxval=bound, dtype=jnp.float32)
    b = jax.random.uniform(kb, (out_features,),
                           minval=-bound, maxval=bound, dtype=jnp.float32)
    return w, b


def _ref_forward(x, w1, b1, w2, b2):
    hp = lax.Precision.HIGHEST
    h = jnp.maximum(jnp.dot(x, w1.T, precision=hp) + b1, 0.0)
    return jnp.dot(h, w2.T, precision=hp) + b2


if __name__ == "__main__":
    input_dim, hidden_dim = 16, 32

    key = jax.random.PRNGKey(0)
    k_x, k_l1, k_l2, k_x2 = jax.random.split(key, 4)

    w1, b1 = _torch_linear_init(k_l1, hidden_dim, input_dim)
    w2, b2 = _torch_linear_init(k_l2, 2, hidden_dim)

    # Small batch: single grid step, block == (padded) full array.
    batch = 8
    x = jax.random.normal(k_x, (batch, input_dim), dtype=jnp.float32)
    out = jax.block_until_ready(single_hidden_layer_nn(x, w1, b1, w2, b2))
    ref = _ref_forward(x, w1, b1, w2, b2)
    assert out.shape == (batch, 2)
    assert jnp.allclose(out, ref, atol=1e-4, rtol=1e-4), \
        float(jnp.max(jnp.abs(out - ref)))

    # Larger batch exercising the tiled grid + batch-padding path (3 grid steps).
    batch2 = 300
    x2 = jax.random.normal(k_x2, (batch2, input_dim), dtype=jnp.float32)
    out2 = jax.block_until_ready(
        single_hidden_layer_nn(x2, w1, b1, w2, b2, tile_b=128))
    ref2 = _ref_forward(x2, w1, b1, w2, b2)
    assert out2.shape == (batch2, 2)
    assert jnp.allclose(out2, ref2, atol=1e-4, rtol=1e-4), \
        float(jnp.max(jnp.abs(out2 - ref2)))

    print("KERNEL_OK")
</pallas_src>

<mosaic_0001>
module attributes {stable_mosaic.version = 11 : i64} {
  func.func @_mlp_kernel(%arg0: i32, %arg1: memref<8x128xf32, #tpu.memory_space<vmem>>, %arg2: memref<128x256xf32, #tpu.memory_space<vmem>>, %arg3: memref<1x256xf32, #tpu.memory_space<vmem>>, %arg4: memref<256x16xf32, #tpu.memory_space<vmem>>, %arg5: memref<1x16xf32, #tpu.memory_space<vmem>>, %arg6: memref<8x16xf32, #tpu.memory_space<vmem>>) attributes {dimension_semantics = [#tpu.dimension_semantics<parallel>], iteration_bounds = array<i64: 1>, scalar_prefetch = 0 : i64, scratch_operands = 0 : i64, tpu.core_type = #tpu.core_type<tc>, window_params = [{transform_indices = @transform_0, window_bounds = array<i64: 8, 128>}, {pipeline_mode = #tpu.pipeline_mode<synchronous>, transform_indices = @transform_1, window_bounds = array<i64: 128, 256>}, {pipeline_mode = #tpu.pipeline_mode<synchronous>, transform_indices = @transform_2, window_bounds = array<i64: 1, 256>}, {pipeline_mode = #tpu.pipeline_mode<synchronous>, transform_indices = @transform_3, window_bounds = array<i64: 256, 16>}, {pipeline_mode = #tpu.pipeline_mode<synchronous>, transform_indices = @transform_4, window_bounds = array<i64: 1, 16>}, {transform_indices = @transform_5, window_bounds = array<i64: 8, 16>}]} {
    %c0 = arith.constant 0 : index
    %c0_0 = arith.constant 0 : index
    %0 = vector.load %arg1[%c0, %c0_0] : memref<8x128xf32, #tpu.memory_space<vmem>>, vector<8x128xf32>
    %c0_1 = arith.constant 0 : index
    %c0_2 = arith.constant 0 : index
    %1 = vector.load %arg2[%c0_1, %c0_2] : memref<128x256xf32, #tpu.memory_space<vmem>>, vector<128x256xf32>
    %cst = arith.constant dense<0.000000e+00> : vector<8x256xf32>
    %2 = tpu.matmul %0, %1, %cst {dimension_numbers = #tpu.dot_dimension_numbers<[1], [0], [0], [1], [0, 0, 1, 1], [], []>} : vector<8x128xf32>, vector<128x256xf32>, vector<8x256xf32> -> vector<8x256xf32>
    %c0_3 = arith.constant 0 : index
    %c0_4 = arith.constant 0 : index
    %3 = vector.load %arg3[%c0_3, %c0_4] : memref<1x256xf32, #tpu.memory_space<vmem>>, vector<1x256xf32>
    %4 = vector.broadcast %3 : vector<1x256xf32> to vector<8x256xf32>
    %5 = arith.addf %2, %4 : vector<8x256xf32>
    %cst_5 = arith.constant 0.000000e+00 : f32
    %6 = vector.broadcast %cst_5 : f32 to vector<8x256xf32>
    %7 = arith.maximumf %5, %6 : vector<8x256xf32>
    %c0_6 = arith.constant 0 : index
    %c0_7 = arith.constant 0 : index
    %8 = vector.load %arg4[%c0_6, %c0_7] : memref<256x16xf32, #tpu.memory_space<vmem>>, vector<256x16xf32>
    %cst_8 = arith.constant dense<0.000000e+00> : vector<8x16xf32>
    %9 = tpu.matmul %7, %8, %cst_8 {dimension_numbers = #tpu.dot_dimension_numbers<[1], [0], [0], [1], [0, 0, 1, 1], [], []>} : vector<8x256xf32>, vector<256x16xf32>, vector<8x16xf32> -> vector<8x16xf32>
    %c0_9 = arith.constant 0 : index
    %c0_10 = arith.constant 0 : index
    %10 = vector.load %arg5[%c0_9, %c0_10] : memref<1x16xf32, #tpu.memory_space<vmem>>, vector<1x16xf32>
    %11 = vector.broadcast %10 : vector<1x16xf32> to vector<8x16xf32>
    %12 = arith.addf %9, %11 : vector<8x16xf32>
    %c0_11 = arith.constant 0 : index
    %c0_12 = arith.constant 0 : index
    %13 = vector.load %arg6[%c0_11, %c0_12] : memref<8x16xf32, #tpu.memory_space<vmem>>, vector<8x16xf32>
    tpu.vector_store %arg6[%c0_11, %c0_12], %12 {strides = array<i32>} : memref<8x16xf32, #tpu.memory_space<vmem>>, vector<8x16xf32>,
    return
  }
  func.func @transform_0(%arg0: i32) -> (i32, i32) {
    %c0_i32 = arith.constant 0 : i32
    %c0_i32_0 = arith.constant 0 : i32
    return %arg0, %c0_i32 : i32, i32
  }
  func.func @transform_1(%arg0: i32) -> (i32, i32) {
    %c0_i32 = arith.constant 0 : i32
    %c0_i32_0 = arith.constant 0 : i32
    %c0_i32_1 = arith.constant 0 : i32
    return %c0_i32, %c0_i32_0 : i32, i32
  }
  func.func @transform_2(%arg0: i32) -> (i32, i32) {
    %c0_i32 = arith.constant 0 : i32
    %c0_i32_0 = arith.constant 0 : i32
    %c0_i32_1 = arith.constant 0 : i32
    return %c0_i32, %c0_i32_0 : i32, i32
  }
  func.func @transform_3(%arg0: i32) -> (i32, i32) {
    %c0_i32 = arith.constant 0 : i32
    %c0_i32_0 = arith.constant 0 : i32
    %c0_i32_1 = arith.constant 0 : i32
    return %c0_i32, %c0_i32_0 : i32, i32
  }
  func.func @transform_4(%arg0: i32) -> (i32, i32) {
    %c0_i32 = arith.constant 0 : i32
    %c0_i32_0 = arith.constant 0 : i32
    %c0_i32_1 = arith.constant 0 : i32
    return %c0_i32, %c0_i32_0 : i32, i32
  }
  func.func @transform_5(%arg0: i32) -> (i32, i32) {
    %c0_i32 = arith.constant 0 : i32
    %c0_i32_0 = arith.constant 0 : i32
    return %arg0, %c0_i32 : i32, i32
  }
}

</mosaic_0001>

<bundles_post_ra>
// kernel: tpu_custom_call.1
= control target key start
LH: loop header
LB: loop body
LE: loop exit
PB: predicated region body
PF: predicated region fallthrough
CT: control target
= control target key end

     0   :  { %v390_v7 = vmov 0.0   ;;  %s635_s0 = inlined_call_operand.vmem [shape: f32[8,128], index: 0, kind: input, shape index: {}]   ;;  %s636_s1 = inlined_call_operand.vmem [shape: f32[128,256], index: 1, kind: input, shape index: {}]   ;;  %s637_s2 = inlined_call_operand.vmem [shape: f32[1,256], index: 2, kind: input, shape index: {}]   ;;  %s638_s3 = inlined_call_operand.vmem [shape: f32[256,16], index: 3, kind: input, shape index: {}]   ;;  %s639_s4 = inlined_call_operand.vmem [shape: f32[1,16], index: 4, kind: input, shape index: {}]   ;;  %s640_s5 = inlined_call_operand.hbm [shape: f32[8,16], index: 5, kind: output, shape index: {}]  }
   0x1   :  { %v23_v0 = vld [vmem:[%s636_s1 + $0x8] sm:$0xff]  ;;  %v25_v1 = vld [vmem:[%s636_s1 + $0x18] sm:$0xff]  ;;  %v22_v2 = vld [vmem:[%s636_s1] sm:$0xff]  ;;  %130 = vmatprep.mubr.f32.mxu0 %v390_v7 }
   0x2   :  { %v300_v3 = vpack.c.bf16 %v25_v1, %v23_v0  ;;  %v24_v4 = vld [vmem:[%s636_s1 + $0x10] sm:$0xff]  ;;  %v27_v5 = vld [vmem:[%s636_s1 + $0x28] sm:$0xff]  ;;  %v29_v6 = vld [vmem:[%s636_s1 + $0x38] sm:$0xff] }
   0x3   :  { %v302_v8 = vpack.c.bf16 %v24_v4, %v22_v2  ;;  %v304_v9 = vpack.c.bf16 %v29_v6, %v27_v5  ;;  %v26_v10 = vld [vmem:[%s636_s1 + $0x20] sm:$0xff]  ;;  %v28_v11 = vld [vmem:[%s636_s1 + $0x30] sm:$0xff]  ;;  %v31_v12 = vld [vmem:[%s636_s1 + $0x48] sm:$0xff] }
   0x4   :  { %301 = vmatprep.subr.bf16.mxu0 %v300_v3  ;;  %v33_v13 = vld [vmem:[%s636_s1 + $0x58] sm:$0xff]  ;;  %v306_v14 = vpack.c.bf16 %v28_v11, %v26_v10  ;;  %v30_v16 = vld [vmem:[%s636_s1 + $0x40] sm:$0xff]  ;;  %v32_v17 = vld [vmem:[%s636_s1 + $0x50] sm:$0xff] }
   0x5   :  { %303 = vmatpush1.bf16.msra.mxu0 %v302_v8  ;;  %v308_v15 = vpack.c.bf16 %v33_v13, %v31_v12  ;;  %v35_v18 = vld [vmem:[%s636_s1 + $0x68] sm:$0xff]  ;;  %v37_v19 = vld [vmem:[%s636_s1 + $0x78] sm:$0xff]  ;;  %v310_v20 = vpack.c.bf16 %v32_v17, %v30_v16  ;;  %v34_v22 = vld [vmem:[%s636_s1 + $0x60] sm:$0xff] }
   0x6   :  { %305 = vmatprep.subr.bf16.mxu0 %v304_v9  ;;  %v312_v21 = vpack.c.bf16 %v37_v19, %v35_v18  ;;  %v36_v23 = vld [vmem:[%s636_s1 + $0x70] sm:$0xff]  ;;  %v39_v24 = vld [vmem:[%s636_s1 + $0x88] sm:$0xff]  ;;  %v41_v25 = vld [vmem:[%s636_s1 + $0x98] sm:$0xff] }
   0x7   :  { %v38_v26 = vld [vmem:[%s636_s1 + $0x80] sm:$0xff]  ;;  %v40_v27 = vld [vmem:[%s636_s1 + $0x90] sm:$0xff]  ;;  %v156_v29 = vld [vmem:[%s638_s3 + $0x88] sm:$0xff]  ;;  %v314_v31 = vpack.c.bf16 %v36_v23, %v34_v22  ;;  %v316_v36 = vpack.c.bf16 %v41_v25, %v39_v24 }
   0x8   :  { %v155_v28 = vld [vmem:[%s638_s3 + $0x80] sm:$0xff]  ;;  %v140_v33 = vld [vmem:[%s638_s3 + $0x8] sm:$0xff]  ;;  %v157_v34 = vld [vmem:[%s638_s3 + $0x90] sm:$0xff]  ;;  %v318_v46 = vpack.c.bf16 %v40_v27, %v38_v26 }
   0x9   :  { %307 = vmatpush1.bf16.msra.mxu0 %v306_v14  ;;  %v139_v30 = vld [vmem:[%s638_s3] sm:$0xff]  ;;  %v332_v32 = vpack.c.bf16 %v156_v29, %v155_v28  ;;  %v158_v35 = vld [vmem:[%s638_s3 + $0x98] sm:$0xff]  ;;  %v141_v39 = vld [vmem:[%s638_s3 + $0x10] sm:$0xff] }
   0xa   :  { %309 = vmatprep.subr.bf16.mxu0 %v308_v15  ;;  %v334_v37 = vpack.c.bf16 %v140_v33, %v139_v30  ;;  %v336_v38 = vpack.c.bf16 %v158_v35, %v157_v34  ;;  %v142_v40 = vld [vmem:[%s638_s3 + $0x18] sm:$0xff]  ;;  %v159_v41 = vld [vmem:[%s638_s3 + $0xa0] sm:$0xff]  ;;  %v43_v42 = vld [vmem:[%s636_s1 + $0xa8] sm:$0xff] }
   0xb   :  { %v45_v43 = vld [vmem:[%s636_s1 + $0xb8] sm:$0xff]  ;;  %333 = vmatprep.subr.bf16.mxu1 %v332_v32  ;;  %v160_v44 = vld [vmem:[%s638_s3 + $0xa8] sm:$0xff]  ;;  %v338_v45 = vpack.c.bf16 %v142_v40, %v141_v39  ;;  %v42_v47 = vld [vmem:[%s636_s1 + $0xa0] sm:$0xff] }
   0xc   :  { %335 = vmatpush3.bf16.msra.mxu1 %v334_v37  ;;  %v340_v48 = vpack.c.bf16 %v160_v44, %v159_v41  ;;  %v143_v49 = vld [vmem:[%s638_s3 + $0x20] sm:$0xff]  ;;  %v144_v50 = vld [vmem:[%s638_s3 + $0x28] sm:$0xff]  ;;  %v320_v51 = vpack.c.bf16 %v45_v43, %v43_v42  ;;  %v44_v52 = vld [vmem:[%s636_s1 + $0xb0] sm:$0xff] }
   0xd   :  { %311 = vmatpush1.bf16.msra.mxu0 %v310_v20  ;;  %337 = vmatprep.subr.bf16.mxu1 %v336_v38  ;;  %v161_v53 = vld [vmem:[%s638_s3 + $0xb0] sm:$0xff]  ;;  %v162_v54 = vld [vmem:[%s638_s3 + $0xb8] sm:$0xff]  ;;  %v47_v55 = vld [vmem:[%s636_s1 + $0xc8] sm:$0xff]  ;;  %v342_v58 = vpack.c.bf16 %v144_v50, %v143_v49  ;;  %v322_v59 = vpack.c.bf16 %v44_v52, %v42_v47 }
   0xe   :  { %313 = vmatprep.subr.bf16.mxu0 %v312_v21  ;;  %v49_v56 = vld [vmem:[%s636_s1 + $0xd8] sm:$0xff]  ;;  %v46_v57 = vld [vmem:[%s636_s1 + $0xc0] sm:$0xff]  ;;  %v344_v60 = vpack.c.bf16 %v162_v54, %v161_v53  ;;  %v145_v61 = vld [vmem:[%s638_s3 + $0x30] sm:$0xff] }
   0xf   :  { %v146_v62 = vld [vmem:[%s638_s3 + $0x38] sm:$0xff] }
  0x10   :  { %339 = vmatpush3.bf16.msra.mxu1 %v338_v45 }
  0x11   :  { %315 = vmatpush1.bf16.msra.mxu0 %v314_v31  ;;  %341 = vmatprep.subr.bf16.mxu1 %v340_v48 }
  0x12   :  { %317 = vmatprep.subr.bf16.mxu0 %v316_v36 }
  0x15   :  { %319 = vmatpush1.bf16.msra.mxu0 %v318_v46 }
  0x16   :  { %10 = vsyncpa [#allocation3], 0  ;;  %321 = vmatprep.subr.bf16.mxu0 %v320_v51  ;;  %v324_v63 = vpack.c.bf16 %v49_v56, %v47_v55  ;;  %v48_v0 = vld [vmem:[%s636_s1 + $0xd0] sm:$0xff]  ;;  %v163_v1 = vld [vmem:[%s638_s3 + $0xc0] sm:$0xff]  ;;  %343 = vmatpush3.bf16.msra.mxu1 %v342_v58  ;;  %v346_v5 = vpack.c.bf16 %v146_v62, %v145_v61  ;;  %v56_v34 = vlaneseq  ;;  %s391_s24 = smov [#allocation2]   ;;  %vm248_vm0 = vcmask 130048  }
  0x17   :  { %v164_v2 = vld [vmem:[%s638_s3 + $0xc8] sm:$0xff]  ;;  %v53_v4 = vld [vmem:[%s636_s1 + $0xf8] sm:$0xff]  ;;  %v326_v6 = vpack.c.bf16 %v48_v0, %v46_v57  ;;  %v50_v7 = vld [vmem:[%s636_s1 + $0xe0] sm:$0xff]  ;;  %345 = vmatprep.subr.bf16.mxu1 %v344_v60  ;;  %s256_s25 = sshll.u32 %s391_s24, 4  ;;  %s257_s25 = int_to_ptr.vmem [resolvable:$true] %s256_s25 }
  0x18   :  { %v51_v3 = vld [vmem:[%s636_s1 + $0xe8] sm:$0xff]  ;;  %v348_v8 = vpack.c.bf16 %v164_v2, %v163_v1  ;;  %v147_v9 = vld [vmem:[%s638_s3 + $0x40] sm:$0xff]  ;;  %v52_v12 = vld [vmem:[%s636_s1 + $0xf0] sm:$0xff]  ;;  %v57_v35 = vshrl.u32 %v56_v34, 7  ;;  %p371_p1 = scmp.lt.s32.totalorder %s257_s25, %s257_s25 }
  0x19   :  { %323 = vmatpush1.bf16.msra.mxu0 %v322_v59  ;;  %v148_v10 = vld [vmem:[%s638_s3 + $0x48] sm:$0xff]  ;;  %v328_v11 = vpack.c.bf16 %v53_v4, %v51_v3  ;;  %v165_v13 = vld [vmem:[%s638_s3 + $0xd0] sm:$0xff]  ;;  %v166_v14 = vld [vmem:[%s638_s3 + $0xd8] sm:$0xff]  ;;  %v330_v16 = vpack.c.bf16 %v52_v12, %v50_v7 }
  0x1a   :  { %325 = vmatprep.subr.bf16.mxu0 %v324_v63  ;;  %347 = vmatpush3.bf16.msra.mxu1 %v346_v5  ;;  %v350_v15 = vpack.c.bf16 %v148_v10, %v147_v9  ;;  %v352_v17 = vpack.c.bf16 %v166_v14, %v165_v13  ;;  %v149_v18 = vld [vmem:[%s638_s3 + $0x50] sm:$0xff]  ;;  %v150_v19 = vld [vmem:[%s638_s3 + $0x58] sm:$0xff]  ;;  %v167_v20 = vld [vmem:[%s638_s3 + $0xe0] sm:$0xff]  ;;  %v58_v36 = vsub.s32 0, %v57_v35  ;;  %v62_v38 = vsub.s32 1, %v57_v35 }
  0x1b   :  { %349 = vmatprep.subr.bf16.mxu1 %v348_v8  ;;  %v168_v21 = vld [vmem:[%s638_s3 + $0xe8] sm:$0xff]  ;;  %v354_v22 = vpack.c.bf16 %v150_v19, %v149_v18  ;;  %v21_v23 = vld [vmem:[%s635_s0] sm:$0xff]  ;;  %v169_v28 = vld [vmem:[%s638_s3 + $0xf0] sm:$0xff] }
  0x1c   :  { %v356_v24 = vpack.c.bf16 %v168_v21, %v167_v20  ;;  %v151_v25 = vld [vmem:[%s638_s3 + $0x60] sm:$0xff]  ;;  %v152_v26 = vld [vmem:[%s638_s3 + $0x68] sm:$0xff]  ;;  %v170_v29 = vld [vmem:[%s638_s3 + $0xf8] sm:$0xff] }
  0x1d   :  { %327 = vmatpush1.bf16.msra.mxu0 %v326_v6  ;;  %v358_v27 = vpack.c.bf16 %v152_v26, %v151_v25  ;;  %v360_v30 = vpack.c.bf16 %v170_v29, %v169_v28  ;;  %v153_v31 = vld [vmem:[%s638_s3 + $0x70] sm:$0xff]  ;;  %v154_v32 = vld [vmem:[%s638_s3 + $0x78] sm:$0xff]  ;;  %v54_v37 = vld [vmem:[%s637_s2] sm:$0x3]  ;;  %s366_s2 = scalar_lea.vmem %s257_s25, 128 }
  0x1e   :  { %329 = vmatprep.subr.bf16.mxu0 %v328_v11  ;;  %351 = vmatpush3.bf16.msra.mxu1 %v350_v15  ;;  %v362_v33 = vpack.c.bf16 %v154_v32, %v153_v31  ;;  %v59_v39 = vrot.slane %v54_v37, %v58_v36  ;;  %v63_v40 = vrot.slane %v54_v37, %v62_v38  ;;  %v264_v48 = vld [vmem:[%s639_s4] ss:$0 sm:$0xff]  ;;  %p367_p0 = scmp.ne.s32.totalorder %s257_s25, %s366_s2  ;;  %p372_p2 = scmp.lt.s32.totalorder %s366_s2, %s366_s2 }
  0x1f   :  { %353 = vmatprep.subr.bf16.mxu1 %v352_v17 }
  0x20   :  { %p373_p3 = por %p372_p2, %p371_p1 }
  0x21   :  { %331 = vmatpush1.bf16.msra.mxu0 %v330_v16 }
  0x22   :  { %355 = vmatpush3.bf16.msra.mxu1 %v354_v22  ;;  %p374_p4 = pnand %p373_p3, %p367_p0 }
  0x23   :  { %357 = vmatprep.subr.bf16.mxu1 %v356_v24 }
  0x24   :  { %131 = vmatmul.mubr.f32.vlgmr.msra.gmra.mrb[0].mxu0 %v21_v23 }
  0x26   :  { %359 = vmatpush3.bf16.msra.mxu1 %v358_v27 }
  0x27   :  { %361 = vmatprep.subr.bf16.mxu1 %v360_v30 }
  0x2a   :  { %363 = vmatpush3.bf16.msra.mxu1 %v362_v33 }
  0xf7   :  { %v132_v41 = vpop.f32.mrb[0].mxu0 }
  0xf8   :  { %v133_v42 = vadd.f32 %v132_v41, %v59_v39  ;;  %v134_v43 = vpop.f32.mrb[1].mxu0 }
  0xf9   :  { %v135_v44 = vadd.f32 %v134_v43, %v63_v40 }
  0xfa   :  { %v137_v46 = vmax.f32 %v133_v42, 0.0 }
  0xfb   :  { %v138_v45 = vmax.f32 %v135_v44, 0.0 }
  0xfd   :  { %242 = vmatprep.mubr.f32.mxu1 %v138_v45 }
  0xfe   :  { %243 = vmatmul.mubr.f32.vlgmr.msra.gmra.mrb[0].mxu1 %v137_v46 }
 0x1d1   :  { %v297_v47 = vpop.f32.mrb[0].mxu1 }
 0x1d2   :  { %v298_v49 = vpop.f32.mrb[1].mxu1 }
 0x1d3   :  { %v299_v50 = vadd.f32 %v298_v49, %v297_v47 }
 0x1d5   :  { %v245_v51 = vadd.f32 %v299_v50, %v264_v48 }
 0x1d7   :  { %249 = vst.msk [vmem:[#allocation2] sm:$0xff] %vm248_vm0, %v245_v51 }
 0x1d8   :  { %377 = shalt.err (!%p374_p4)
}
 0x1d9   :  { %s378_s28 = scalar_lea.hbm %s640_s5, 128 }
 0x1da   :  { %p379_p5 = scmp.ne.s32.totalorder %s640_s5, %s378_s28  ;;  %p382_p6 = scmp.lt.u32.totalorder %s378_s28, %s640_s5 }
 0x1dc   :  { %p384_p7 = pnand %p382_p6, %p379_p5 }
 0x1de   :  { %387 = shalt.err (!%p384_p7)
}
 0x1df   :  { %259 = dma.vmem_to_hbm [thread:$0]  %s257_s25, 128, %s640_s5, [#allocation3]  }
 0x1e0   :  { %388 = dma.done.wait [#allocation3], 128  }
 0x1e1   :  { %389 = vsyncadd [#allocation3], 4294967168 }
 0x1e2   :  { %263 = vsyncpa [#allocation3], 1 }

</bundles_post_ra>
